<compile_context>
chip_gen: v7x
topology: tpu7x:2x2x1
jax: 0.10.0
libtpu: 0.0.40
codegen_flags: <defaults>
</compile_context>

<pallas_src>
import functools

import jax
import jax.numpy as jnp
from jax import lax
from jax.experimental import pallas as pl
from jax.experimental.pallas import tpu as pltpu


# ----------------------------------------------------------------------------
# W-tile heuristic: lane-dense (multiple of 128) kernel columns, preferring the
# smallest tile that reaches ~256 lanes so larger W gives a deeper grid.
# ----------------------------------------------------------------------------
def _choose_w_tile(W, r, cout, lane_target=256):
    divs = [d for d in range(1, W + 1) if W % d == 0]
    dense = [d for d in divs if (r * d * r * cout) % 128 == 0]
    if not dense:
        return W
    big_enough = [d for d in dense if r * d * r * cout >= lane_target]
    return min(big_enough) if big_enough else max(dense)


# ----------------------------------------------------------------------------
# One-time parameter preparation ("module init"): block-structured matmul RHS
# for ONE W-tile + bias in the same (ry, w, rx, c) column order.
# ----------------------------------------------------------------------------
def make_pixel_shuffle_pack_params(weight_oihw, bias, *, in_channels, out_channels,
                                   scale_factor, upsample_kernel, w_tile,
                                   param_dtype=jnp.bfloat16):
    k, r, Cout, Cin, Wt = upsample_kernel, scale_factor, out_channels, in_channels, w_tile
    assert k % 2 == 1, "even upsample_kernel changes the conv output size; unsupported"
    ncols = r * Wt * r * Cout

    # torch weight layout: (Cout*r*r, Cin, k, k) with o = c*r*r + ry*r + rx.
    w = weight_oihw.astype(jnp.float32)
    w6 = w.reshape(Cout, r, r, Cin, k, k)                     # (c, ry, rx, ci, ky, kx)
    wk = jnp.transpose(w6, (4, 5, 3, 1, 2, 0))                # (ky, kx, ci, ry, rx, c)
    eye = jnp.eye(Wt, dtype=jnp.float32)
    # R[ky,kx,w_in,ci, ry,w_out,rx,c] = wk[ky,kx,ci,ry,rx,c] * (w_in == w_out)
    R = jnp.einsum('yxiabc,wv->yxwiavbc', wk, eye)
    R = R.reshape(k * k * Wt * Cin, ncols).astype(param_dtype)

    b3 = jnp.transpose(bias.reshape(Cout, r, r), (1, 2, 0))   # (ry, rx, c)
    b_cols = jnp.broadcast_to(b3[:, None, :, :], (r, Wt, r, Cout))
    b_cols = b_cols.reshape(1, ncols).astype(jnp.float32)     # accumulation dtype
    return R, b_cols


# ----------------------------------------------------------------------------
# Pallas kernel: pack k*k taps into one VMEM scratch, one long-K MXU matmul,
# bias add, lane-dense store.  One (image, W-tile) per grid step.
# ----------------------------------------------------------------------------
def _fused_conv_shuffle_kernel(x_ref, w_ref, b_ref, o_ref, taps_ref, *, H, Wt, Cin, k):
    # x_ref:    (Hp, (Wt+k-1)*Cin)  zero-padded input W-tile with halo, lanes = (w, cin)
    # w_ref:    (k*k*Wt*Cin, Ncols) block weight, cols = (ry, w, rx, c)   [grid invariant]
    # b_ref:    (1, Ncols)          f32 bias in the same column order     [grid invariant]
    # o_ref:    (H, Ncols)          Ncols = r*Wt*r*Cout  (lane-dense multiple of 128)
    # taps_ref: (H, k*k*Wt*Cin)     VMEM scratch: concatenated im2col taps
    WC = Wt * Cin
    for ky in range(k):
        for kx in range(k):
            t = ky * k + kx
            taps_ref[:, t * WC:(t + 1) * WC] = x_ref[ky:ky + H, kx * Cin:kx * Cin + WC]
    acc = jnp.dot(taps_ref[...], w_ref[...], preferred_element_type=jnp.float32)
    o_ref[...] = (acc + b_ref[...]).astype(o_ref.dtype)


# ----------------------------------------------------------------------------
# PixelShufflePack forward (module semantics: NCHW in, NCHW out by default).
# ----------------------------------------------------------------------------
def pixel_shuffle_pack_forward(x_nchw, r_block, b_cols, *, out_channels, scale_factor,
                               upsample_kernel, w_tile, channels_last=False):
    N, Cin, H, W = x_nchw.shape
    k, r, Cout, Wt = upsample_kernel, scale_factor, out_channels, w_tile
    assert k % 2 == 1, "even upsample_kernel changes the conv output size; unsupported"
    assert W % Wt == 0, "w_tile must divide W"
    pad = (k - 1) // 2
    num_wt = W // Wt
    Hp, Whalo = H + 2 * pad, Wt + 2 * pad
    ncols = r * Wt * r * Cout
    kdim = k * k * Wt * Cin
    compute_dtype = r_block.dtype
    out_dtype = x_nchw.dtype

    # Cheap input-side glue (pre-upsample tensor is r^2*Cout/Cin x smaller than the
    # output): NCHW -> padded NHWC -> overlapping W-tiles (halo = k-1 cols).
    x_nhwc = jnp.transpose(x_nchw, (0, 2, 3, 1))
    xp = jnp.pad(x_nhwc, ((0, 0), (pad, pad), (pad, pad), (0, 0))).astype(compute_dtype)
    x_tiles = jnp.stack([xp[:, :, t * Wt:t * Wt + Whalo, :] for t in range(num_wt)], axis=1)
    x_tiles = x_tiles.reshape(N, num_wt, Hp, Whalo * Cin)

    kern = functools.partial(_fused_conv_shuffle_kernel, H=H, Wt=Wt, Cin=Cin, k=k)

    csize = jnp.dtype(compute_dtype).itemsize
    osize = jnp.dtype(out_dtype).itemsize
    block_bytes = (Hp * Whalo * Cin * csize + kdim * ncols * csize + ncols * 4
                   + H * ncols * osize)
    vmem_limit = int(min(max(2 * (2 * block_bytes + H * kdim * csize), 32 << 20), 64 << 20))
    # True conv FLOPs (advisory for XLA scheduling), not the Wt-inflated matmul count.
    flops = 2 * N * H * W * k * k * Cin * r * r * Cout
    bytes_accessed = int(x_tiles.size * csize + kdim * ncols * csize + ncols * 4
                         + N * num_wt * H * ncols * osize)

    out = pl.pallas_call(
        kern,
        out_shape=jax.ShapeDtypeStruct((N, num_wt, H, ncols), out_dtype),
        grid_spec=pltpu.PrefetchScalarGridSpec(
            num_scalar_prefetch=0,
            grid=(N, num_wt),
            in_specs=[
                pl.BlockSpec((None, None, Hp, Whalo * Cin), lambda n, w: (n, w, 0, 0)),
                # Grid-invariant blocks: same block index every step -> fetched once.
                pl.BlockSpec((kdim, ncols), lambda n, w: (0, 0)),
                pl.BlockSpec((1, ncols), lambda n, w: (0, 0)),
            ],
            out_specs=pl.BlockSpec((None, None, H, ncols), lambda n, w: (n, w, 0, 0)),
            scratch_shapes=[pltpu.VMEM((H, kdim), compute_dtype)],
        ),
        compiler_params=pltpu.CompilerParams(
            dimension_semantics=("parallel", "parallel"),
            vmem_limit_bytes=vmem_limit),
        cost_estimate=pl.CostEstimate(flops=flops, transcendentals=0,
                                      bytes_accessed=bytes_accessed),
    )(x_tiles, r_block, b_cols)

    # Kernel columns are already in shuffle order (ry, w, rx, c).  With a single W-tile
    # the transpose below only moves a size-1 axis (elided by XLA), so NHWC is a free
    # reshape of the kernel output — no extra HBM pass over the upsampled tensor.
    y = out.reshape(N, num_wt, H, r, Wt, r, Cout)
    y = jnp.transpose(y, (0, 2, 3, 1, 4, 5, 6))              # (N, H, r, num_wt, Wt, r, C)
    y_nhwc = y.reshape(N, H * r, W * r, Cout)
    if channels_last:
        return y_nhwc
    return jnp.transpose(y_nhwc, (0, 3, 1, 2))               # module's NCHW contract


# ----------------------------------------------------------------------------
# Pure-JAX reference (lax.conv + pixel shuffle) for validation.
# ----------------------------------------------------------------------------
def _reference(x_nchw, weight_oihw, bias, *, out_channels, scale_factor, upsample_kernel):
    pad = (upsample_kernel - 1) // 2
    r = scale_factor
    conv = lax.conv_general_dilated(
        x_nchw, weight_oihw, window_strides=(1, 1),
        padding=[(pad, pad), (pad, pad)],
        dimension_numbers=("NCHW", "OIHW", "NCHW")) + bias.reshape(1, -1, 1, 1)
    N, _, H, W = conv.shape
    y = conv.reshape(N, out_channels, r, r, H, W)
    y = jnp.transpose(y, (0, 1, 4, 2, 5, 3))
    return y.reshape(N, out_channels, H * r, W * r)


if __name__ == "__main__":
    in_channels, out_channels = 4, 4
    scale_factor, upsample_kernel = 2, 3
    N, H, W = 2, 16, 16

    key = jax.random.PRNGKey(0)
    kx_, kw_ = jax.random.split(key)
    x = jax.random.normal(kx_, (N, in_channels, H, W), dtype=jnp.float32)

    # Deterministic kaiming-style init (fan_in, normal), scale=1, bias=0 (module shapes).
    conv_out = out_channels * scale_factor * scale_factor
    fan_in = in_channels * upsample_kernel * upsample_kernel
    std = (2.0 / fan_in) ** 0.5
    weight = std * jax.random.normal(
        kw_, (conv_out, in_channels, upsample_kernel, upsample_kernel), dtype=jnp.float32)
    bias = jnp.zeros((conv_out,), dtype=jnp.float32)

    ref = _reference(x, weight, bias, out_channels=out_channels,
                     scale_factor=scale_factor, upsample_kernel=upsample_kernel)

    w_tile = _choose_w_tile(W, scale_factor, out_channels)
    common = dict(out_channels=out_channels, scale_factor=scale_factor,
                  upsample_kernel=upsample_kernel, w_tile=w_tile)

    # Precompute the block-structured weights ONCE (module init), not per forward call.
    r_bf16, b_cols = make_pixel_shuffle_pack_params(
        weight, bias, in_channels=in_channels, param_dtype=jnp.bfloat16, **common)
    r_f32, _ = make_pixel_shuffle_pack_params(
        weight, bias, in_channels=in_channels, param_dtype=jnp.float32, **common)

    fwd = jax.jit(functools.partial(pixel_shuffle_pack_forward, **common))

    # Default path: bf16 inputs/weights, f32 accumulation.
    out_bf16 = jax.block_until_ready(fwd(x, r_bf16, b_cols))
    assert out_bf16.shape == (N, out_channels, H * scale_factor, W * scale_factor)
    assert jnp.allclose(out_bf16, ref, atol=1e-1, rtol=1e-1)

    # Strict-accuracy path: f32 end to end.
    out_f32 = jax.block_until_ready(fwd(x, r_f32, b_cols))
    assert out_f32.shape == ref.shape
    assert jnp.allclose(out_f32, ref, atol=1e-4, rtol=1e-4)

    # NHWC fast path: skips the output-side NCHW transpose of the largest tensor.
    fwd_nhwc = jax.jit(functools.partial(pixel_shuffle_pack_forward,
                                         channels_last=True, **common))
    out_nhwc = jax.block_until_ready(fwd_nhwc(x, r_bf16, b_cols))
    assert jnp.allclose(out_nhwc, jnp.transpose(ref, (0, 2, 3, 1)), atol=1e-1, rtol=1e-1)

    print("KERNEL_OK")
</pallas_src>

<mosaic_0001>
module attributes {stable_mosaic.version = 11 : i64} {
  func.func @_fused_conv_shuffle_kernel(%arg0: i32, %arg1: i32, %arg2: memref<1x1x18x72xbf16, #tpu.memory_space<vmem>>, %arg3: memref<576x256xbf16, #tpu.memory_space<vmem>>, %arg4: memref<1x256xf32, #tpu.memory_space<vmem>>, %arg5: memref<1x1x16x256xf32, #tpu.memory_space<vmem>>, %arg6: memref<16x576xbf16, #tpu.memory_space<vmem>>) attributes {dimension_semantics = [#tpu.dimension_semantics<parallel>, #tpu.dimension_semantics<parallel>], iteration_bounds = array<i64: 2, 1>, scalar_prefetch = 0 : i64, scratch_operands = 1 : i64, tpu.core_type = #tpu.core_type<tc>, window_params = [{transform_indices = @transform_0, window_bounds = array<i64: 1, 1, 18, 72>}, {pipeline_mode = #tpu.pipeline_mode<synchronous>, transform_indices = @transform_1, window_bounds = array<i64: 576, 256>}, {pipeline_mode = #tpu.pipeline_mode<synchronous>, transform_indices = @transform_2, window_bounds = array<i64: 1, 256>}, {transform_indices = @transform_3, window_bounds = array<i64: 1, 1, 16, 256>}]} {
    %c0 = arith.constant 0 : index
    %c0_0 = arith.constant 0 : index
    %c0_1 = arith.constant 0 : index
    %c0_2 = arith.constant 0 : index
    %0 = vector.load %arg2[%c0, %c0_0, %c0_1, %c0_2] : memref<1x1x18x72xbf16, #tpu.memory_space<vmem>>, vector<1x1x16x64xbf16>
    %1 = vector.shape_cast %0 : vector<1x1x16x64xbf16> to vector<16x64xbf16>
    %c0_3 = arith.constant 0 : index
    %c0_4 = arith.constant 0 : index
    %2 = vector.load %arg6[%c0_3, %c0_4] : memref<16x576xbf16, #tpu.memory_space<vmem>>, vector<16x64xbf16>
    tpu.vector_store %arg6[%c0_3, %c0_4], %1 {strides = array<i32>} : memref<16x576xbf16, #tpu.memory_space<vmem>>, vector<16x64xbf16>,
    %c0_5 = arith.constant 0 : index
    %c0_6 = arith.constant 0 : index
    %c0_7 = arith.constant 0 : index
    %c4 = arith.constant 4 : index
    %3 = vector.load %arg2[%c0_5, %c0_6, %c0_7, %c4] : memref<1x1x18x72xbf16, #tpu.memory_space<vmem>>, vector<1x1x16x64xbf16>
    %4 = vector.shape_cast %3 : vector<1x1x16x64xbf16> to vector<16x64xbf16>
    %c0_8 = arith.constant 0 : index
    %c64 = arith.constant 64 : index
    %5 = vector.load %arg6[%c0_8, %c64] : memref<16x576xbf16, #tpu.memory_space<vmem>>, vector<16x64xbf16>
    tpu.vector_store %arg6[%c0_8, %c64], %4 {strides = array<i32>} : memref<16x576xbf16, #tpu.memory_space<vmem>>, vector<16x64xbf16>,
    %c0_9 = arith.constant 0 : index
    %c0_10 = arith.constant 0 : index
    %c0_11 = arith.constant 0 : index
    %c8 = arith.constant 8 : index
    %6 = vector.load %arg2[%c0_9, %c0_10, %c0_11, %c8] : memref<1x1x18x72xbf16, #tpu.memory_space<vmem>>, vector<1x1x16x64xbf16>
    %7 = vector.shape_cast %6 : vector<1x1x16x64xbf16> to vector<16x64xbf16>
    %c0_12 = arith.constant 0 : index
    %c128 = arith.constant 128 : index
    %8 = vector.load %arg6[%c0_12, %c128] : memref<16x576xbf16, #tpu.memory_space<vmem>>, vector<16x64xbf16>
    tpu.vector_store %arg6[%c0_12, %c128], %7 {strides = array<i32>} : memref<16x576xbf16, #tpu.memory_space<vmem>>, vector<16x64xbf16>,
    %c0_13 = arith.constant 0 : index
    %c0_14 = arith.constant 0 : index
    %c1 = arith.constant 1 : index
    %c0_15 = arith.constant 0 : index
    %9 = vector.load %arg2[%c0_13, %c0_14, %c1, %c0_15] : memref<1x1x18x72xbf16, #tpu.memory_space<vmem>>, vector<1x1x16x64xbf16>
    %10 = vector.shape_cast %9 : vector<1x1x16x64xbf16> to vector<16x64xbf16>
    %c0_16 = arith.constant 0 : index
    %c192 = arith.constant 192 : index
    %11 = vector.load %arg6[%c0_16, %c192] : memref<16x576xbf16, #tpu.memory_space<vmem>>, vector<16x64xbf16>
    tpu.vector_store %arg6[%c0_16, %c192], %10 {strides = array<i32>} : memref<16x576xbf16, #tpu.memory_space<vmem>>, vector<16x64xbf16>,
    %c0_17 = arith.constant 0 : index
    %c0_18 = arith.constant 0 : index
    %c1_19 = arith.constant 1 : index
    %c4_20 = arith.constant 4 : index
    %12 = vector.load %arg2[%c0_17, %c0_18, %c1_19, %c4_20] : memref<1x1x18x72xbf16, #tpu.memory_space<vmem>>, vector<1x1x16x64xbf16>
    %13 = vector.shape_cast %12 : vector<1x1x16x64xbf16> to vector<16x64xbf16>
    %c0_21 = arith.constant 0 : index
    %c256 = arith.constant 256 : index
    %14 = vector.load %arg6[%c0_21, %c256] : memref<16x576xbf16, #tpu.memory_space<vmem>>, vector<16x64xbf16>
    tpu.vector_store %arg6[%c0_21, %c256], %13 {strides = array<i32>} : memref<16x576xbf16, #tpu.memory_space<vmem>>, vector<16x64xbf16>,
    %c0_22 = arith.constant 0 : index
    %c0_23 = arith.constant 0 : index
    %c1_24 = arith.constant 1 : index
    %c8_25 = arith.constant 8 : index
    %15 = vector.load %arg2[%c0_22, %c0_23, %c1_24, %c8_25] : memref<1x1x18x72xbf16, #tpu.memory_space<vmem>>, vector<1x1x16x64xbf16>
    %16 = vector.shape_cast %15 : vector<1x1x16x64xbf16> to vector<16x64xbf16>
    %c0_26 = arith.constant 0 : index
    %c320 = arith.constant 320 : index
    %17 = vector.load %arg6[%c0_26, %c320] : memref<16x576xbf16, #tpu.memory_space<vmem>>, vector<16x64xbf16>
    tpu.vector_store %arg6[%c0_26, %c320], %16 {strides = array<i32>} : memref<16x576xbf16, #tpu.memory_space<vmem>>, vector<16x64xbf16>,
    %c0_27 = arith.constant 0 : index
    %c0_28 = arith.constant 0 : index
    %c2 = arith.constant 2 : index
    %c0_29 = arith.constant 0 : index
    %18 = vector.load %arg2[%c0_27, %c0_28, %c2, %c0_29] : memref<1x1x18x72xbf16, #tpu.memory_space<vmem>>, vector<1x1x16x64xbf16>
    %19 = vector.shape_cast %18 : vector<1x1x16x64xbf16> to vector<16x64xbf16>
    %c0_30 = arith.constant 0 : index
    %c384 = arith.constant 384 : index
    %20 = vector.load %arg6[%c0_30, %c384] : memref<16x576xbf16, #tpu.memory_space<vmem>>, vector<16x64xbf16>
    tpu.vector_store %arg6[%c0_30, %c384], %19 {strides = array<i32>} : memref<16x576xbf16, #tpu.memory_space<vmem>>, vector<16x64xbf16>,
    %c0_31 = arith.constant 0 : index
    %c0_32 = arith.constant 0 : index
    %c2_33 = arith.constant 2 : index
    %c4_34 = arith.constant 4 : index
    %21 = vector.load %arg2[%c0_31, %c0_32, %c2_33, %c4_34] : memref<1x1x18x72xbf16, #tpu.memory_space<vmem>>, vector<1x1x16x64xbf16>
    %22 = vector.shape_cast %21 : vector<1x1x16x64xbf16> to vector<16x64xbf16>
    %c0_35 = arith.constant 0 : index
    %c448 = arith.constant 448 : index
    %23 = vector.load %arg6[%c0_35, %c448] : memref<16x576xbf16, #tpu.memory_space<vmem>>, vector<16x64xbf16>
    tpu.vector_store %arg6[%c0_35, %c448], %22 {strides = array<i32>} : memref<16x576xbf16, #tpu.memory_space<vmem>>, vector<16x64xbf16>,
    %c0_36 = arith.constant 0 : index
    %c0_37 = arith.constant 0 : index
    %c2_38 = arith.constant 2 : index
    %c8_39 = arith.constant 8 : index
    %24 = vector.load %arg2[%c0_36, %c0_37, %c2_38, %c8_39] : memref<1x1x18x72xbf16, #tpu.memory_space<vmem>>, vector<1x1x16x64xbf16>
    %25 = vector.shape_cast %24 : vector<1x1x16x64xbf16> to vector<16x64xbf16>
    %c0_40 = arith.constant 0 : index
    %c512 = arith.constant 512 : index
    %26 = vector.load %arg6[%c0_40, %c512] : memref<16x576xbf16, #tpu.memory_space<vmem>>, vector<16x64xbf16>
    tpu.vector_store %arg6[%c0_40, %c512], %25 {strides = array<i32>} : memref<16x576xbf16, #tpu.memory_space<vmem>>, vector<16x64xbf16>,
    %c0_41 = arith.constant 0 : index
    %c0_42 = arith.constant 0 : index
    %27 = vector.load %arg6[%c0_41, %c0_42] : memref<16x576xbf16, #tpu.memory_space<vmem>>, vector<16x576xbf16>
    %c0_43 = arith.constant 0 : index
    %c0_44 = arith.constant 0 : index
    %28 = vector.load %arg3[%c0_43, %c0_44] : memref<576x256xbf16, #tpu.memory_space<vmem>>, vector<576x256xbf16>
    %cst = arith.constant dense<0.000000e+00> : vector<16x256xf32>
    %29 = tpu.matmul %27, %28, %cst {dimension_numbers = #tpu.dot_dimension_numbers<[1], [0], [0], [1], [0, 0, 1, 1], [], []>} : vector<16x576xbf16>, vector<576x256xbf16>, vector<16x256xf32> -> vector<16x256xf32>
    %c0_45 = arith.constant 0 : index
    %c0_46 = arith.constant 0 : index
    %30 = vector.load %arg4[%c0_45, %c0_46] : memref<1x256xf32, #tpu.memory_space<vmem>>, vector<1x256xf32>
    %31 = vector.broadcast %30 : vector<1x256xf32> to vector<16x256xf32>
    %32 = arith.addf %29, %31 : vector<16x256xf32>
    %c0_47 = arith.constant 0 : index
    %c0_48 = arith.constant 0 : index
    %c0_49 = arith.constant 0 : index
    %c0_50 = arith.constant 0 : index
    %33 = vector.load %arg5[%c0_47, %c0_48, %c0_49, %c0_50] : memref<1x1x16x256xf32, #tpu.memory_space<vmem>>, vector<1x1x16x256xf32>
    %34 = vector.shape_cast %33 : vector<1x1x16x256xf32> to vector<16x256xf32>
    %35 = vector.shape_cast %32 : vector<16x256xf32> to vector<1x1x16x256xf32>
    tpu.vector_store %arg5[%c0_47, %c0_48, %c0_49, %c0_50], %35 {strides = array<i32>} : memref<1x1x16x256xf32, #tpu.memory_space<vmem>>, vector<1x1x16x256xf32>,
    return
  }
  func.func @transform_0(%arg0: i32, %arg1: i32) -> (i32, i32, i32, i32) {
    %c0_i32 = arith.constant 0 : i32
    %c0_i32_0 = arith.constant 0 : i32
    %c0_i32_1 = arith.constant 0 : i32
    return %arg0, %arg1, %c0_i32, %c0_i32_0 : i32, i32, i32, i32
  }
  func.func @transform_1(%arg0: i32, %arg1: i32) -> (i32, i32) {
    %c0_i32 = arith.constant 0 : i32
    %c0_i32_0 = arith.constant 0 : i32
    %c0_i32_1 = arith.constant 0 : i32
    return %c0_i32, %c0_i32_0 : i32, i32
  }
  func.func @transform_2(%arg0: i32, %arg1: i32) -> (i32, i32) {
    %c0_i32 = arith.constant 0 : i32
    %c0_i32_0 = arith.constant 0 : i32
    %c0_i32_1 = arith.constant 0 : i32
    return %c0_i32, %c0_i32_0 : i32, i32
  }
  func.func @transform_3(%arg0: i32, %arg1: i32) -> (i32, i32, i32, i32) {
    %c0_i32 = arith.constant 0 : i32
    %c0_i32_0 = arith.constant 0 : i32
    %c0_i32_1 = arith.constant 0 : i32
    return %arg0, %arg1, %c0_i32, %c0_i32_0 : i32, i32, i32, i32
  }
}

</mosaic_0001>

<bundles_post_ra>
// kernel: pixel_shuffle_pack_forward.1
= control target key start
LH: loop header
LB: loop body
LE: loop exit
PB: predicated region body
PF: predicated region fallthrough
CT: control target
= control target key end

     0   :  { %8 = vsyncpa [#allocation4], 0  ;;  %s1442_s12 = smov 0   ;;  %s1444_s13 = smov 0   ;;  %s1560_s0 = inlined_call_operand.vmem [shape: bf16[2,1,18,72], index: 0, kind: input, shape index: {}]   ;;  %s1561_s1 = inlined_call_operand.hbm [shape: bf16[576,256], index: 1, kind: input, shape index: {}]   ;;  %s1562_s2 = inlined_call_operand.vmem [shape: f32[1,256], index: 2, kind: input, shape index: {}]   ;;  %s1563_s3 = inlined_call_operand.vmem [shape: f32[2,1,16,256], index: 3, kind: output, shape index: {}]  }
   0x1   :  { %s1446_s14 = smov 0  }
   0x2 LB: > { %s1081_s15 = sadd.s32 4294967295, %s1411_s14   ;;  %s26_s16 = sadd.s32 1, %s1407_s13  ;;  %s1411_s14 = sphi %s1446_s14, %s14_s14   ;;  %s1407_s13 = sphi %s1444_s13, %s1573_s13   ;;  %s1403_s12 = sphi %s1442_s12, %s1572_s12  }
   0x3   : > { %p28_p0 = scmp.ge.s32.totalorder %s26_s16, 2  ;;  %p1083_p1 = scmp.ge.s32.totalorder %s1411_s14, 1 }
   0x4   : > { %p129_p2 = scmp.lt.s32.totalorder %s1411_s14, 3  ;;  %p1467_p4 = scmp.eq.s32.totalorder %s1081_s15, 0 }
   0x5   : > { %s1575_s16 = smov (%p28_p0, %s26_s16), 0  ;;  %s1413_s19 = smov [#allocation3]  }
   0x6   : > { %p1463_p3 = pnand %p1083_p1, %p129_p2  ;;  %s141_s20 = sshll.u32 %s1413_s19, 4  ;;  %s142_s20 = int_to_ptr.vmem [resolvable:$true] %s141_s20 }
   0x7   : > { %s1568_s18 = scalar_select %p1467_p4, 1, 0 }
   0x8   : > { %s1567_s17 = scalar_select %p1463_p3, 1, 0 }
   0x9   : > { %p1199_p5 = pneg %p1463_p3  ;;  %s1357_s24 = scalar_lea.hbm %s1561_s1, 9216 }
   0xa   : > { %p1358_p7 = scmp.ne.s32.totalorder %s1561_s1, %s1357_s24  ;;  %p1364_p11 = scmp.lt.u32.totalorder %s1357_s24, %s1561_s1 }
   0xb   : > { %p1475_p6 = pnand %p1467_p4, %p1199_p5 }
   0xd   : > { %p1359_p8 = pneg %p1475_p6 }
   0xf   : > { %p1360_p9 = pnand %p1359_p8, %p1358_p7 }
  0x11   : > { %p1361_p10 = pneg %p1360_p9 }
  0x13   : > { %p1366_p12 = pnand %p1364_p11, %p1361_p10 }
  0x15   : > { %1369 = shalt.err (!%p1366_p12)
}
  0x16   : > { %s1370_s29 = scalar_lea.vmem %s142_s20, 9216  ;;  %p1378_p2 = scmp.lt.s32.totalorder %s142_s20, %s142_s20 }
  0x17   : > { %p1371_p13 = scmp.ne.s32.totalorder %s142_s20, %s1370_s29  ;;  %p1379_p5 = scmp.lt.s32.totalorder %s1370_s29, %s1370_s29 }
  0x19   : > { %p1373_p0 = pnand %p1371_p13, %p1359_p8  ;;  %p1380_p4 = por %p1379_p5, %p1378_p2 }
  0x1b   : > { %p1374_p1 = pneg %p1373_p0 }
  0x1d   : > { %p1381_p3 = pnand %p1380_p4, %p1374_p1 }
  0x1f   : > { %1384 = shalt.err (!%p1381_p3)
}
  0x20   : > { %s1414_s30 = smov 128   ;;  %s1415_s4 = smov 8  }
  0x21   : > { %1202 = dma.hbm_to_vmem [thread:$0]  (!%p1475_p6), %s1561_s1, 9216, %s142_s20, [#allocation4], %s1414_s30, %s1414_s30, %s1415_s4  }
  0x22   : > { %p1570_p7 = scmp.ne.s32.totalorder %s1567_s17, 0 }
  0x23   : > { %p1571_p9 = scmp.ne.s32.totalorder (!%p1570_p7), %s1568_s18, 0 }
  0x24   : > { %172 = sbr.rel (%p1570_p7) target bundleno = 420 (0x1a4), region = 32 }
  0x2b   : > { %1398 = dma.done.wait (%p1571_p9), [#allocation4], 9216  }
  0x2c   : > { %1400 = vsyncadd (%p1571_p9), [#allocation4], 4294958080  ;;  %p204_p3 = scmp.lt.s32.totalorder %s1403_s12, 1  ;;  %vm267_vm0 = vsmask.f32 7424  ;;  %vm349_vm1 = vcmask 1046528  }
  0x2d   : > { %vm231_vm2 = vcmask 523264   ;;  %s1416_s11 = smov 124   ;;  %s1417_s15 = smov 60   ;;  %v1252_v38 = vld [vmem:[#allocation3 + $0x104] ss:$8 sps:$4 sm:$0xff]   ;;  %vm243_vm3 = vcmask 1048064  }
  0x2e   : > { %s1577_s12 = smov (!%p204_p3, %s1403_s12), 1  ;;  %s1418_s17 = smov 56   ;;  %v1254_v39 = vld [vmem:[#allocation3 + $0x100] ss:$8 sps:$4 sm:$0xff]   ;;  %v1255_v44 = vld [vmem:[#allocation3 + $0x114] ss:$8 sps:$4 sm:$0xff]   ;;  %886 = vmatprep.subr.bf16.mxu0 %v1252_v38 }
  0x2f   : > { %s1194_s7 = smul.u32 12, %s1577_s12  ;;  %v1257_v45 = vld [vmem:[#allocation3 + $0x110] ss:$8 sps:$4 sm:$0xff]   ;;  %v1258_v46 = vld [vmem:[#allocation3 + $0x124] ss:$8 sps:$4 sm:$0xff]   ;;  %s1419_s18 = smov 120   ;;  %887 = vmatpush1.bf16.msra.mxu0 %v1254_v39 }
  0x30   : > { %v1261_v48 = vld [vmem:[#allocation3 + $0x4] ss:$8 sps:$4 sm:$0xff]   ;;  %s1420_s19 = smov 64   ;;  %888 = vmatprep.subr.bf16.mxu0 %v1255_v44  ;;  %v1263_v49 = vld [vmem:[#allocation3] ss:$8 sps:$4 sm:$0xff]   ;;  %s1181_s22 = sshll.u32 %s1577_s12, 5 }
  0x31   : > { %s1509_s10 = scalar_lea.vmem %s1560_s0, %s1194_s7  ;;  %843 = vmatprep.subr.bf16.mxu1 %v1261_v48  ;;  %v1267_v51 = vld [vmem:[#allocation3 + $0x14] ss:$8 sps:$4 sm:$0xff]   ;;  %v1269_v52 = vld [vmem:[#allocation3 + $0x10] ss:$8 sps:$4 sm:$0xff]   ;;  %v1260_v53 = vld [vmem:[#allocation3 + $0x120] ss:$8 sps:$4 sm:$0xff]   ;;  %s221_s25 = scalar_lea.vmem %s1563_s3, %s1181_s22 }
  0x32   : > { %v1238_v0 = vld [vmem:[%s1509_s10] sm:$0xff]   ;;  %v1239_v1 = vld [vmem:[%s1509_s10 + $0x8] ss:$0 sps:$4 sm:$0x11]   ;;  %844 = vmatpush1.bf16.msra.mxu1 %v1263_v49  ;;  %v1273_v55 = vld [vmem:[#allocation3 + $0x24] ss:$8 sps:$4 sm:$0xff]  }
  0x33   : > { %v1240_v2 = vld [vmem:[%s1509_s10] sm:$0xfe]   ;;  %v296_v3 = vshrl.u32 %v1238_v0, 16  ;;  %v298_v4 = vshll.u32 %v1238_v0, 16  ;;  %v303_v5 = vshll.u32 %v1239_v1, 16  ;;  %889 = vmatpush1.bf16.msra.mxu0 %v1257_v45  ;;  %845 = vmatprep.subr.bf16.mxu1 %v1267_v51  ;;  %v426_v49 = vld [vmem:[#allocation3 + $0xf0] sm:$0xff] }
  0x34   : > { %v1241_v6 = vld [vmem:[%s1509_s10 + $0x8] ss:$0 sps:$4 sm:$0x11]   ;;  %v350_v7 = vrot.slane %v1240_v2, 1  ;;  %v1244_v8 = vld [vmem:[%s1509_s10] sm:$0xff]   ;;  %890 = vmatprep.subr.bf16.mxu0 %v1258_v46 }
  0x35   : > { %v300_v9 = vrot.slane %v298_v4, 1  ;;  %v305_v10 = vrot.slane %v303_v5, 1  ;;  %v351_v11 = vrot.slane %v1241_v6, 1  ;;  %v1242_v12 = vld [vmem:[%s1509_s10] sm:$0xfe]   ;;  %v323_v14 = vshrl.u32 %v1244_v8, 16 }
  0x36   : > { %v1243_v13 = vld [vmem:[%s1509_s10 + $0x8] ss:$0 sps:$4 sm:$0x11]   ;;  %v366_v17 = vrot.slane %v1242_v12, 1  ;;  %v325_v20 = vshll.u32 %v1244_v8, 16  ;;  %v1247_v25 = vld [vmem:[%s1509_s10] sm:$0xff]   ;;  %846 = vmatpush1.bf16.msra.mxu1 %v1269_v52 }
  0x37   : > { %v301_v15 = vor.u32 %v300_v9, %v296_v3  ;;  %v352_v16 = vsel %vm349_vm1, %v350_v7, %v351_v11  ;;  %v367_v18 = vrot.slane %v1243_v13, 1  ;;  %v1245_v19 = vld [vmem:[%s1509_s10 + $0x8] ss:$0 sps:$4 sm:$0x11]   ;;  %v1246_v29 = vld [vmem:[%s1509_s10] sm:$0xff]   ;;  %v269_v30 = vshrl.u32 %v1247_v25, 16  ;;  %891 = vmatpush1.bf16.msra.mxu0 %v1260_v53  ;;  %847 = vmatprep.subr.bf16.mxu1 %v1273_v55 }
  0x38   : > { %354 = vst.msk [vmem:[#allocation2 + $0x18] sm:$0xff] %vm231_vm2, %v352_v16  ;;  %v327_v22 = vrot.slane %v325_v20, 1  ;;  %v330_v23 = vshll.u32 %v1245_v19, 16  ;;  %v1248_v26 = vld [vmem:[%s1509_s10 + $0x8] ss:$0 sps:$4 sm:$0x11]  }
  0x39   : > { %v306_v21 = vsel %vm267_vm0, %v301_v15, %v305_v10  ;;  %v368_v24 = vsel %vm349_vm1, %v366_v17, %v367_v18  ;;  %v271_v31 = vshll.u32 %v1247_v25, 16  ;;  %v276_v32 = vshll.u32 %v1248_v26, 16  ;;  %v1250_v34 = vld [vmem:[%s1509_s10] sm:$0xfe]   ;;  %v1275_v57 = vld [vmem:[#allocation3 + $0x20] ss:$8 sps:$4 sm:$0xff]  }
  0x3a   : > { %307 = vrot.lane.b32.xlu0 %v306_v21, %s1416_s11  ;;  %v328_v27 = vor.u32 %v327_v22, %v323_v14  ;;  %v332_v28 = vrot.slane %v330_v23, 1  ;;  %v1251_v37 = vld [vmem:[%s1509_s10 + $0x8] ss:$0 sps:$4 sm:$0x11]   ;;  %v1249_v41 = vld [vmem:[%s1509_s10] sm:$0xff]   ;;  %v384_v42 = vrot.slane %v1250_v34, 1  ;;  %848 = vmatpush1.bf16.msra.mxu1 %v1275_v57 }
  0x3b   : > { %v273_v35 = vrot.slane %v271_v31, 1  ;;  %v278_v36 = vrot.slane %v276_v32, 1  ;;  %v385_v43 = vrot.slane %v1251_v37, 1  ;;  %v1264_v54 = vld [vmem:[#allocation3 + $0x134] ss:$8 sps:$4 sm:$0xff]   ;;  %v416_v22 = vld [vmem:[#allocation3 + $0xa0] sm:$0xff] }
  0x3c   : > { %v333_v33 = vsel %vm267_vm0, %v328_v27, %v332_v28  ;;  %v1266_v56 = vld [vmem:[#allocation3 + $0x130] ss:$8 sps:$4 sm:$0xff]   ;;  %v1279_v58 = vld [vmem:[#allocation3 + $0x34] ss:$8 sps:$4 sm:$0xff]   ;;  %892 = vmatprep.subr.bf16.mxu0 %v1264_v54  ;;  %v1270_v59 = vld [vmem:[#allocation3 + $0x144] ss:$8 sps:$4 sm:$0xff]  }
  0x3d   : > { %334 = vrot.lane.b32.xlu1 %v333_v33, %s1418_s17  ;;  %v274_v40 = vor.u32 %v273_v35, %v269_v30  ;;  %v386_v50 = vsel %vm349_vm1, %v384_v42, %v385_v43  ;;  %v1272_v60 = vld [vmem:[#allocation3 + $0x140] ss:$8 sps:$4 sm:$0xff]   ;;  %v1281_v61 = vld [vmem:[#allocation3 + $0x30] ss:$8 sps:$4 sm:$0xff]   ;;  %893 = vmatpush1.bf16.msra.mxu0 %v1266_v56  ;;  %v1285_v62 = vld [vmem:[#allocation3 + $0x44] ss:$8 sps:$4 sm:$0xff]  }
  0x3e   : > { %369 = vrot.lane.b32.xlu0 %v368_v24, %s1417_s15  ;;  %849 = vmatprep.subr.bf16.mxu1 %v1279_v58  ;;  %v1276_v63 = vld [vmem:[#allocation3 + $0x154] ss:$8 sps:$4 sm:$0xff]   ;;  %v1278_v0 = vld [vmem:[#allocation3 + $0x150] ss:$8 sps:$4 sm:$0xff]   ;;  %v1287_v1 = vld [vmem:[#allocation3 + $0x40] ss:$8 sps:$4 sm:$0xff]  }
  0x3f   : > { %v279_v47 = vsel %vm267_vm0, %v274_v40, %v278_v36  ;;  %894 = vmatprep.subr.bf16.mxu0 %v1270_v59  ;;  %850 = vmatpush1.bf16.msra.mxu1 %v1281_v61  ;;  %v1291_v2 = vld [vmem:[#allocation3 + $0x54] ss:$8 sps:$4 sm:$0xff]   ;;  %v1282_v3 = vld [vmem:[#allocation3 + $0x164] ss:$8 sps:$4 sm:$0xff]   ;;  %v1284_v4 = vld [vmem:[#allocation3 + $0x160] ss:$8 sps:$4 sm:$0xff]  }
  0x40   : > { %851 = vmatprep.subr.bf16.mxu1 %v1285_v62  ;;  %v1293_v5 = vld [vmem:[#allocation3 + $0x50] ss:$8 sps:$4 sm:$0xff]   ;;  %v1297_v6 = vld [vmem:[#allocation3 + $0x64] ss:$8 sps:$4 sm:$0xff]   ;;  %v1288_v7 = vld [vmem:[#allocation3 + $0x174] ss:$8 sps:$4 sm:$0xff]  }
  0x41   : > { %252 = vrot.lane.b32.xlu1 %v1246_v29, %s1419_s18  ;;  %895 = vmatpush1.bf16.msra.mxu0 %v1272_v60  ;;  %v1290_v8 = vld [vmem:[#allocation3 + $0x170] ss:$8 sps:$4 sm:$0xff]   ;;  %v1299_v9 = vld [vmem:[#allocation3 + $0x60] ss:$8 sps:$4 sm:$0xff]   ;;  %v1303_v10 = vld [vmem:[#allocation3 + $0x74] ss:$8 sps:$4 sm:$0xff]  }
  0x42   : > { %280 = vrot.lane.b32.xlu0 %v279_v47, %s1420_s19  ;;  %896 = vmatprep.subr.bf16.mxu0 %v1276_v63  ;;  %v1294_v11 = vld [vmem:[#allocation3 + $0x184] ss:$8 sps:$4 sm:$0xff]   ;;  %v1305_v12 = vld [vmem:[#allocation3 + $0x70] ss:$8 sps:$4 sm:$0xff]   ;;  %v1296_v13 = vld [vmem:[#allocation3 + $0x180] ss:$8 sps:$4 sm:$0xff]  }
  0x43   : > { %852 = vmatpush1.bf16.msra.mxu1 %v1287_v1  ;;  %v1309_v14 = vld [vmem:[#allocation3 + $0x84] ss:$8 sps:$4 sm:$0xff]   ;;  %v1300_v15 = vld [vmem:[#allocation3 + $0x194] ss:$8 sps:$4 sm:$0xff]   ;;  %v1302_v16 = vld [vmem:[#allocation3 + $0x190] ss:$8 sps:$4 sm:$0xff]  }
  0x44   : > { %853 = vmatprep.subr.bf16.mxu1 %v1291_v2  ;;  %v1311_v17 = vld [vmem:[#allocation3 + $0x80] ss:$8 sps:$4 sm:$0xff]   ;;  %v1315_v18 = vld [vmem:[#allocation3 + $0x94] ss:$8 sps:$4 sm:$0xff]   ;;  %v1306_v19 = vld [vmem:[#allocation3 + $0x1a4] ss:$8 sps:$4 sm:$0xff]  }
  0x45   : > { %240 = vrot.lane.b32.xlu1 %v1249_v41, %s1417_s15  ;;  %897 = vmatpush1.bf16.msra.mxu0 %v1278_v0  ;;  %v1308_v20 = vld [vmem:[#allocation3 + $0x1a0] ss:$8 sps:$4 sm:$0xff]   ;;  %v1317_v21 = vld [vmem:[#allocation3 + $0x90] ss:$8 sps:$4 sm:$0xff]   ;;  %v1312_v23 = vld [vmem:[#allocation3 + $0x1b4] ss:$8 sps:$4 sm:$0xff]  }
  0x46   : > { %387 = vrot.lane.b32.xlu0 %v386_v50, %s1419_s18  ;;  %898 = vmatprep.subr.bf16.mxu0 %v1282_v3  ;;  %v417_v24 = vld [vmem:[#allocation3 + $0xa8] sm:$0xff]  ;;  %v1342_v26 = vld [vmem:[%s1509_s10] sm:$0xff]   ;;  %v418_v29 = vld [vmem:[#allocation3 + $0xb0] sm:$0xff]  ;;  %v1421_v2 = vmov 0  }
  0x47   : > { %854 = vmatpush1.bf16.msra.mxu1 %v1293_v5  ;;  %v1321_v25 = vld [vmem:[#allocation3 + $0xa4] ss:$8 sps:$4 sm:$0xff]   ;;  %v1314_v27 = vld [vmem:[#allocation3 + $0x1b0] ss:$8 sps:$4 sm:$0xff]   ;;  %v1126_v28 = vcombine.low %v416_v22, %v417_v24  ;;  %232 = vst.msk [vmem:[#allocation2] sm:$0xff] %vm231_vm2, %v1342_v26 }
  0x48   : > { %855 = vmatprep.subr.bf16.mxu1 %v1297_v6  ;;  %v419_v30 = vld [vmem:[#allocation3 + $0xb8] sm:$0xff]  ;;  %v1318_v32 = vld [vmem:[#allocation3 + $0x1c4] ss:$8 sps:$4 sm:$0xff]   ;;  %v1320_v34 = vld [vmem:[#allocation3 + $0x1c0] ss:$8 sps:$4 sm:$0xff]  }
  0x49   : > { %899 = vmatpush1.bf16.msra.mxu0 %v1284_v4  ;;  %v1326_v31 = vld [vmem:[#allocation3 + $0xb4] ss:$8 sps:$4 sm:$0xff]   ;;  %v1128_v33 = vcombine.low %v418_v29, %v419_v30  ;;  %v1330_v35 = vld [vmem:[#allocation3 + $0xc4] ss:$8 sps:$4 sm:$0xff]   ;;  %v1332_v37 = vld [vmem:[#allocation3 + $0xc0] ss:$8 sps:$4 sm:$0xff]  }
  0x4a   : > { %900 = vmatprep.subr.bf16.mxu0 %v1288_v7  ;;  %v1323_v36 = vld [vmem:[#allocation3 + $0x1d4] ss:$8 sps:$4 sm:$0xff]   ;;  %v1325_v38 = vld [vmem:[#allocation3 + $0x1d0] ss:$8 sps:$4 sm:$0xff]   ;;  %v456_v40 = vld [vmem:[#allocation3 + $0x1e0] sm:$0xff] }
  0x4b   : > { %856 = vmatpush1.bf16.msra.mxu1 %v1299_v9  ;;  %v1336_v39 = vld [vmem:[#allocation3 + $0xd4] ss:$8 sps:$4 sm:$0xff]   ;;  %v457_v41 = vld [vmem:[#allocation3 + $0x1e8] sm:$0xff]  ;;  %v1338_v43 = vld [vmem:[#allocation3 + $0xd0] ss:$8 sps:$4 sm:$0xff]  }
  0x4c   : > { %857 = vmatprep.subr.bf16.mxu1 %v1303_v10  ;;  %v1328_v42 = vld [vmem:[#allocation3 + $0x1e4] ss:$8 sps:$4 sm:$0xff]   ;;  %v1166_v44 = vcombine.low %v456_v40, %v457_v41  ;;  %v1333_v46 = vld [vmem:[#allocation3 + $0x1f4] ss:$8 sps:$4 sm:$0xff]   ;;  %v1335_v47 = vld [vmem:[#allocation3 + $0x1f0] ss:$8 sps:$4 sm:$0xff]   ;;  %v470_v10 = vlaneseq }
  0x4d   : > { %901 = vmatpush1.bf16.msra.mxu0 %v1290_v8  ;;  %v1343_v45 = vld [vmem:[#allocation3 + $0xe4] ss:$8 sps:$4 sm:$0xff]   ;;  %v1345_v48 = vld [vmem:[#allocation3 + $0xe0] ss:$8 sps:$4 sm:$0xff]   ;;  %v427_v50 = vld [vmem:[#allocation3 + $0xf8] sm:$0xff] }
  0x4e   : > { %902 = vmatprep.subr.bf16.mxu0 %v1294_v11  ;;  %v1349_v51 = vld [vmem:[#allocation3 + $0xf4] ss:$8 sps:$4 sm:$0xff]   ;;  %v1341_v52 = vld [vmem:[#allocation3 + $0x204] ss:$8 sps:$4 sm:$0xff]   ;;  %v1136_v53 = vcombine.low %v426_v49, %v427_v50  ;;  %v1339_v59 = vld [vmem:[#allocation3 + $0x200] ss:$8 sps:$4 sm:$0xff]  }
  0x4f   : > { %858 = vmatpush1.bf16.msra.mxu1 %v1305_v12  ;;  %v1348_v61 = vld [vmem:[#allocation3 + $0x214] ss:$8 sps:$4 sm:$0xff]   ;;  %v1346_v1 = vld [vmem:[#allocation3 + $0x210] ss:$8 sps:$4 sm:$0xff]   ;;  %v1353_v3 = vld [vmem:[#allocation3 + $0x224] ss:$8 sps:$4 sm:$0xff]  }
  0x50   : > { %859 = vmatprep.subr.bf16.mxu1 %v1309_v14  ;;  %v1351_v5 = vld [vmem:[#allocation3 + $0x220] ss:$8 sps:$4 sm:$0xff]   ;;  %v1356_v6 = vld [vmem:[#allocation3 + $0x234] ss:$8 sps:$4 sm:$0xff]   ;;  %v1354_v8 = vld [vmem:[#allocation3 + $0x230] ss:$8 sps:$4 sm:$0xff]  }
  0x51   : > { %903 = vmatpush1.bf16.msra.mxu0 %v1296_v13  ;;  %v471_v11 = vshrl.u32 %v470_v10, 7  ;;  %v468_v13 = vld [vmem:[%s1562_s2] sm:$0x3] }
  0x52   : > { %904 = vmatprep.subr.bf16.mxu0 %v1300_v15 }
  0x53   : > { %860 = vmatpush1.bf16.msra.mxu1 %v1311_v17  ;;  %v472_v12 = vsub.s32 0, %v471_v11  ;;  %v476_v14 = vsub.s32 1, %v471_v11 }
  0x54   : > { %861 = vmatprep.subr.bf16.mxu1 %v1315_v18 }
  0x55   : > { %905 = vmatpush1.bf16.msra.mxu0 %v1302_v16  ;;  %v473_v16 = vrot.slane %v468_v13, %v472_v12  ;;  %v477_v18 = vrot.slane %v468_v13, %v476_v14 }
  0x56   : > { %906 = vmatprep.subr.bf16.mxu0 %v1306_v19 }
  0x57   : > { %862 = vmatpush1.bf16.msra.mxu1 %v1317_v21 }
  0x58   : > { %863 = vmatprep.subr.bf16.mxu1 %v1321_v25 }
  0x59   : > { %907 = vmatpush1.bf16.msra.mxu0 %v1308_v20 }
  0x5a   : > { %908 = vmatprep.subr.bf16.mxu0 %v1312_v23 }
  0x5b   : > { %864 = vmatpush1.bf16.msra.mxu1 %v1126_v28 }
  0x5c   : > { %865 = vmatprep.subr.bf16.mxu1 %v1326_v31 }
  0x5d   : > { %909 = vmatpush1.bf16.msra.mxu0 %v1314_v27 }
  0x5e   : > { %910 = vmatprep.subr.bf16.mxu0 %v1318_v32 }
  0x5f   : > { %866 = vmatpush1.bf16.msra.mxu1 %v1128_v33 }
  0x60   : > { %867 = vmatprep.subr.bf16.mxu1 %v1330_v35 }
  0x61   : > { %911 = vmatpush1.bf16.msra.mxu0 %v1320_v34 }
  0x62   : > { %912 = vmatprep.subr.bf16.mxu0 %v1323_v36 }
  0x63   : > { %868 = vmatpush1.bf16.msra.mxu1 %v1332_v37 }
  0x64   : > { %869 = vmatprep.subr.bf16.mxu1 %v1336_v39 }
  0x65   : > { %913 = vmatpush1.bf16.msra.mxu0 %v1325_v38 }
  0x66   : > { %914 = vmatprep.subr.bf16.mxu0 %v1328_v42 }
  0x67   : > { %870 = vmatpush1.bf16.msra.mxu1 %v1338_v43 }
  0x68   : > { %871 = vmatprep.subr.bf16.mxu1 %v1343_v45 }
  0x69   : > { %915 = vmatpush1.bf16.msra.mxu0 %v1166_v44 }
  0x6a   : > { %916 = vmatprep.subr.bf16.mxu0 %v1333_v46 }
  0x6b   : > { %872 = vmatpush1.bf16.msra.mxu1 %v1345_v48 }
  0x6c   : > { %873 = vmatprep.subr.bf16.mxu1 %v1349_v51 }
  0x6d   : > { %917 = vmatpush1.bf16.msra.mxu0 %v1335_v47 }
  0x6e   : > { %929 = vmatprep.subr.bf16.mxu0 %v1341_v52 }
  0x6f   : > { %874 = vmatpush1.bf16.msra.mxu1 %v1136_v53 }
  0xac   : > { %v308_v54 = vpop.permute.xlu0 %307 }
  0xad   : > { %310 = vst.msk [vmem:[#allocation2 + $0x10] sm:$0xff] %vm231_vm2, %v308_v54 }
  0xaf   : > { %v335_v56 = vpop.permute.xlu1 %334 }
  0xb0   : > { %v370_v55 = vpop.permute.xlu0 %369  ;;  %337 = vst.msk [vmem:[#allocation2 + $0x10] sm:$0xff] %vm243_vm3, %v335_v56 }
  0xb1   : > { %372 = vst.msk [vmem:[#allocation2 + $0x18] sm:$0xff] %vm243_vm3, %v370_v55 }
  0xb3   : > { %v253_v57 = vpop.permute.xlu1 %252 }
  0xb4   : > { %255 = vst.msk [vmem:[#allocation2 + $0x8] sm:$0xff] %vm231_vm2, %v253_v57  ;;  %v281_v58 = vpop.permute.xlu0 %280 }
  0xb5   : > { %283 = vst.msk [vmem:[#allocation2 + $0x8] sm:$0xff] %vm243_vm3, %v281_v58 }
  0xb7   : > { %v393_v62 = vld [vmem:[#allocation2 + $0x10] sm:$0xff]  ;;  %v241_v63 = vpop.permute.xlu1 %240 }
  0xb8   : > { %v394_v60 = vld [vmem:[#allocation2 + $0x18] sm:$0xff]  ;;  %244 = vst.msk [vmem:[#allocation2] sm:$0xff] %vm243_vm3, %v241_v63  ;;  %v388_v0 = vpop.permute.xlu0 %387 }
  0xb9   : > { %918 = vmatprep.mubr.bf16.mxu0 %v394_v60  ;;  %390 = vst.msk [vmem:[#allocation2 + $0x20] sm:$0xff] %vm231_vm2, %v388_v0 }
  0xba   : > { %919 = vmatmul.mubr.bf16.vlgmr.msra.gmra.mrb[0].mxu0 %v393_v62 }
  0xbb   : > { %930 = vmatpush1.bf16.msra.mxu0 %v1339_v59  ;;  %961 = vmatprep.mubr.bf16.mxu0 %v1421_v2 }
  0xbc   : > { %931 = vmatprep.subr.bf16.mxu0 %v1348_v61  ;;  %v392_v4 = vld [vmem:[#allocation2 + $0x8] sm:$0xff] }
  0xbd   : > { %875 = vmatprep.mubr.bf16.mxu1 %v392_v4 }
  0xbf   : > { %932 = vmatpush1.bf16.msra.mxu0 %v1346_v1  ;;  %v391_v7 = vld [vmem:[#allocation2] sm:$0xff] }
  0xc0   : > { %933 = vmatprep.subr.bf16.mxu0 %v1353_v3  ;;  %876 = vmatmul.mubr.bf16.vlgmr.msra.gmra.mrb[0].mxu1 %v391_v7  ;;  %v395_v9 = vld [vmem:[#allocation2 + $0x20] sm:$0xff] }
  0xc3   : > { %934 = vmatpush1.bf16.msra.mxu0 %v1351_v5 }
  0xc4   : > { %935 = vmatprep.subr.bf16.mxu0 %v1356_v6 }
  0xc7   : > { %936 = vmatpush1.bf16.msra.mxu0 %v1354_v8 }
  0xca   : > { %1178 = vmatmul.mubr.msk.bf16.vlgmr.msra.gmra.mrb[0].mxu0 %vm231_vm2, %v395_v9 }
 0x193   : > { %v877_v15 = vpop.f32.mrb[0].mxu1 }
 0x194   : > { %v879_v17 = vpop.f32.mrb[1].mxu1  ;;  %v878_v21 = vadd.f32 %v877_v15, %v473_v16 }
 0x195   : > { %v881_v19 = vpop.f32.mrb[2].mxu1  ;;  %v880_v22 = vadd.f32 %v879_v17, %v477_v18 }
 0x196   : > { %v883_v20 = vpop.f32.mrb[3].mxu1  ;;  %v882_v24 = vadd.f32 %v881_v19, %v473_v16 }
 0x197   : > { %v884_v27 = vadd.f32 %v883_v20, %v477_v18 }
 0x19d   : > { %v963_v23 = vpop.f32.mrb[0].mxu0 }
 0x19e   : > { %v1183_v25 = vadd.f32 %v963_v23, %v878_v21  ;;  %v965_v26 = vpop.f32.mrb[1].mxu0 }
 0x19f   : > { %v1185_v28 = vadd.f32 %v965_v26, %v880_v22  ;;  %v967_v29 = vpop.f32.mrb[2].mxu0 }
 0x1a0   : > { %972 = vst [vmem:[%s221_s25] sm:$0xff] %v1183_v25  ;;  %v1187_v30 = vadd.f32 %v967_v29, %v882_v24  ;;  %v969_v31 = vpop.f32.mrb[3].mxu0 }
 0x1a1   : > { %973 = vst [vmem:[%s221_s25 + $0x8] sm:$0xff] %v1185_v28  ;;  %v1189_v32 = vadd.f32 %v969_v31, %v884_v27 }
 0x1a2   : > { %974 = vst [vmem:[%s221_s25 + $0x10] sm:$0xff] %v1187_v30 }
 0x1a3   : > { %975 = vst [vmem:[%s221_s25 + $0x18] sm:$0xff] %v1189_v32 }
 0x1a4 PF: > { %s14_s14 = sadd.s32 1, %s1411_s14   ;;  %s1572_s12 = smov %s1407_s13 }
 0x1a5   : > { %p11_p4 = scmp.ge.s32.totalorder %s14_s14, 4   ;;  %s1573_s13 = smov %s1575_s16 }
 0x1a7   :  { %13 = sbr.rel (!%p11_p4) target bundleno = 2 (0x2), region = 67 }
 0x1ae   :  { %1005 = vsyncpa [#allocation4], 1 }
 0x1af   :  { %1007 = vsyncpa [#allocation4 + $0x1], 1 }

</bundles_post_ra>
